<compile_context>
chip_gen: v7x
topology: tpu7x:2x2x1
jax: 0.10.0
libtpu: 0.0.40
codegen_flags: <defaults>
</compile_context>

<pallas_src>
import functools

import jax
import jax.numpy as jnp
from jax import lax
from jax.experimental import pallas as pl
from jax.experimental.pallas import tpu as pltpu

_LANES = 128
_INNER_ROWS = 256                # rows per inner fori_loop step (32 f32 vregs)
_DEFAULT_CHUNK_BYTES = 4 << 20   # per-input, per-buffer VMEM tile budget


def _round_up(x: int, m: int) -> int:
    return ((x + m - 1) // m) * m


def _heatmap_loss_kernel(pred_ref, gt_ref, out_ref, acc_ref, *,
                         inv_n, chunk_rows, inner_rows):
    # pred_ref/gt_ref: (1, chunk_rows, 128) tiles; acc_ref: (8, 128) f32 (1 vreg).
    c = pl.program_id(1)

    @pl.when(c == 0)
    def _init():
        acc_ref[...] = jnp.zeros_like(acc_ref)

    def partial_sum(start, nrows):
        p = pred_ref[0, pl.ds(start, nrows), :].astype(jnp.float32)
        q = gt_ref[0, pl.ds(start, nrows), :].astype(jnp.float32)
        d = p - q
        # Leading-axis sum over vreg-aligned (8, 128) groups: pure VPU adds,
        # no cross-lane work, no relayout.
        return jnp.sum((d * d).reshape(nrows // 8, 8, _LANES), axis=0)

    n_full = chunk_rows // inner_rows
    rem = chunk_rows - n_full * inner_rows  # static Python int

    acc = acc_ref[...]
    if n_full > 0:
        def body(i, a):
            start = pl.multiple_of(i * inner_rows, inner_rows)
            return a + partial_sum(start, inner_rows)
        acc = lax.fori_loop(0, n_full, body, acc)
    if rem > 0:
        acc = acc + partial_sum(n_full * inner_rows, rem)
    acc_ref[...] = acc  # single (8,128) store per grid step

    @pl.when(c == pl.num_programs(1) - 1)
    def _finalize():
        total = jnp.sum(acc_ref[...])  # reduce exactly one vreg per batch
        out_ref[...] = jnp.full(out_ref.shape, total * inv_n, dtype=out_ref.dtype)


def heatmap_loss(pred: jax.Array, gt: jax.Array, *,
                 max_chunk_rows: int | None = None,
                 max_chunk_bytes: int = _DEFAULT_CHUNK_BYTES) -> jax.Array:
    """Per-batch MSE over (C, H, W). Inputs: (B, C, H, W). Output: (B,) float32."""
    assert pred.shape == gt.shape
    B, C, H, W = pred.shape
    L = C * H * W

    it_pred = jnp.dtype(pred.dtype).itemsize
    it_gt = jnp.dtype(gt.dtype).itemsize
    # Dtype-aware sublane packing multiple: 8 (4B), 16 (2B), 32 (1B).
    sub = 8 * max(1, 4 // min(it_pred, it_gt))

    rows = pl.cdiv(L, _LANES)
    # Cap chunk rows by VMEM byte budget (per input, per buffer).
    cap_rows = max(sub, (max_chunk_bytes // (_LANES * max(it_pred, it_gt))) // sub * sub)
    if max_chunk_rows is not None:
        cap_rows = max(sub, min(cap_rows, _round_up(max_chunk_rows, sub)))
    # Pick chunk_rows that (nearly) divides rows -> minimal padding.
    num_chunks = pl.cdiv(rows, cap_rows)
    chunk_rows = _round_up(pl.cdiv(rows, num_chunks), sub)
    num_chunks = pl.cdiv(rows, chunk_rows)
    rows_pad = chunk_rows * num_chunks
    L_pad = rows_pad * _LANES

    def _prep(x):
        # NCHW is contiguous -> reshape is free; pad only when L is unaligned.
        # Padded elements contribute (0 - 0)^2 = 0 to the sum.
        x = x.reshape(B, L)
        if L_pad != L:
            x = jnp.pad(x, ((0, 0), (0, L_pad - L)))
        return x.reshape(B, rows_pad, _LANES)

    pred_r = _prep(pred)
    gt_r = _prep(gt)

    kernel = functools.partial(
        _heatmap_loss_kernel,
        inv_n=1.0 / float(L),      # true C*H*W, independent of padding/tiling
        chunk_rows=chunk_rows,
        inner_rows=_INNER_ROWS,
    )

    tile_bytes = chunk_rows * _LANES * (it_pred + it_gt)        # both inputs, 1 buffer
    vmem_limit = int(max(32 << 20, 2 * tile_bytes + (4 << 20)))  # double-buffered + slack

    out = pl.pallas_call(
        kernel,
        out_shape=jax.ShapeDtypeStruct((B, 8, _LANES), jnp.float32),
        grid_spec=pltpu.PrefetchScalarGridSpec(
            num_scalar_prefetch=0,
            grid=(B, num_chunks),
            in_specs=[
                pl.BlockSpec((1, chunk_rows, _LANES), lambda b, c: (b, c, 0)),
                pl.BlockSpec((1, chunk_rows, _LANES), lambda b, c: (b, c, 0)),
            ],
            out_specs=pl.BlockSpec((1, 8, _LANES), lambda b, c: (b, 0, 0)),
            scratch_shapes=[pltpu.VMEM((8, _LANES), jnp.float32)],
        ),
        compiler_params=pltpu.CompilerParams(
            dimension_semantics=("parallel", "arbitrary"),
            vmem_limit_bytes=vmem_limit,
        ),
    )(pred_r, gt_r)
    return out[:, 0, 0]


def heatmap_loss_ref(pred, gt):
    # Pure-JAX reference mirroring the PyTorch chained means.
    loss = (pred.astype(jnp.float32) - gt.astype(jnp.float32)) ** 2
    return loss.mean(axis=3).mean(axis=2).mean(axis=1)


def _check(pred, gt, **kw):
    out = heatmap_loss(pred, gt, **kw)
    jax.block_until_ready(out)
    ref = heatmap_loss_ref(pred, gt)
    assert out.shape == (pred.shape[0],), (out.shape, pred.shape)
    assert jnp.allclose(out, ref, rtol=2e-4, atol=1e-6), (out, ref)


if __name__ == "__main__":
    key = jax.random.PRNGKey(0)
    ks = jax.random.split(key, 10)

    # Main case (matches the module spec): B=2, C=4, H=16, W=16 (L % 128 == 0 -> no pad).
    B, C, H, W = 2, 4, 16, 16
    pred = jax.random.normal(ks[0], (B, C, H, W), dtype=jnp.float32)
    gt = jax.random.normal(ks[1], (B, C, H, W), dtype=jnp.float32)
    _check(pred, gt)

    # Odd shape: exercises the minimal zero-padding path (L not a multiple of 128).
    pred2 = jax.random.normal(ks[2], (2, 3, 17, 19), dtype=jnp.float32)
    gt2 = jax.random.normal(ks[3], (2, 3, 17, 19), dtype=jnp.float32)
    _check(pred2, gt2)

    # Multi-chunk path (f32): small forced chunks so the accumulator spans >1 grid step.
    pred3 = jax.random.normal(ks[4], (2, 4, 16, 32), dtype=jnp.float32)
    gt3 = jax.random.normal(ks[5], (2, 4, 16, 32), dtype=jnp.float32)
    _check(pred3, gt3, max_chunk_rows=8)

    # bf16 path: dtype-aware rounding (chunk_rows multiple of 16), cast in-kernel.
    pred4 = jax.random.normal(ks[6], (2, 4, 32, 32), dtype=jnp.bfloat16)
    gt4 = jax.random.normal(ks[7], (2, 4, 32, 32), dtype=jnp.bfloat16)
    _check(pred4, gt4, max_chunk_rows=16)   # also multi-chunk with bf16

    # Larger chunk: exercises the in-kernel fori_loop over 256-row sub-blocks.
    pred5 = jax.random.normal(ks[8], (2, 8, 96, 128), dtype=jnp.float32)
    gt5 = jax.random.normal(ks[9], (2, 8, 96, 128), dtype=jnp.float32)
    _check(pred5, gt5)

    print("KERNEL_OK")
</pallas_src>

<mosaic_0001>
module attributes {stable_mosaic.version = 11 : i64} {
  func.func @_heatmap_loss_kernel(%arg0: i32, %arg1: i32, %arg2: memref<1x8x128xf32, #tpu.memory_space<vmem>>, %arg3: memref<1x8x128xf32, #tpu.memory_space<vmem>>, %arg4: memref<1x8x128xf32, #tpu.memory_space<vmem>>, %arg5: memref<8x128xf32, #tpu.memory_space<vmem>>) attributes {dimension_semantics = [#tpu.dimension_semantics<parallel>, #tpu.dimension_semantics<arbitrary>], iteration_bounds = array<i64: 2, 1>, scalar_prefetch = 0 : i64, scratch_operands = 1 : i64, tpu.core_type = #tpu.core_type<tc>, window_params = [{transform_indices = @transform_0, window_bounds = array<i64: 1, 8, 128>}, {transform_indices = @transform_1, window_bounds = array<i64: 1, 8, 128>}, {transform_indices = @transform_2, window_bounds = array<i64: 1, 8, 128>}]} {
    %c0_i32 = arith.constant 0 : i32
    %0 = arith.cmpi eq, %arg1, %c0_i32 : i32
    %1 = arith.extui %0 : i1 to i32
    %c0_i32_0 = arith.constant 0 : i32
    %2 = arith.cmpi ne, %1, %c0_i32_0 : i32
    scf.if %2 {
      %cst_12 = arith.constant 0.000000e+00 : f32
      %17 = vector.broadcast %cst_12 : f32 to vector<8x128xf32>
      %c0_13 = arith.constant 0 : index
      %c0_14 = arith.constant 0 : index
      %18 = vector.load %arg5[%c0_13, %c0_14] : memref<8x128xf32, #tpu.memory_space<vmem>>, vector<8x128xf32>
      tpu.vector_store %arg5[%c0_13, %c0_14], %17 {strides = array<i32>} : memref<8x128xf32, #tpu.memory_space<vmem>>, vector<8x128xf32>,
    } else {
    }
    %c0 = arith.constant 0 : index
    %c0_1 = arith.constant 0 : index
    %3 = vector.load %arg5[%c0, %c0_1] : memref<8x128xf32, #tpu.memory_space<vmem>>, vector<8x128xf32>
    %c0_2 = arith.constant 0 : index
    %c0_3 = arith.constant 0 : index
    %c0_4 = arith.constant 0 : index
    %4 = vector.load %arg2[%c0_2, %c0_3, %c0_4] : memref<1x8x128xf32, #tpu.memory_space<vmem>>, vector<1x8x128xf32>
    %5 = vector.shape_cast %4 : vector<1x8x128xf32> to vector<8x128xf32>
    %c0_5 = arith.constant 0 : index
    %c0_6 = arith.constant 0 : index
    %c0_7 = arith.constant 0 : index
    %6 = vector.load %arg3[%c0_5, %c0_6, %c0_7] : memref<1x8x128xf32, #tpu.memory_space<vmem>>, vector<1x8x128xf32>
    %7 = vector.shape_cast %6 : vector<1x8x128xf32> to vector<8x128xf32>
    %8 = arith.subf %5, %7 : vector<8x128xf32>
    %9 = arith.mulf %8, %8 : vector<8x128xf32>
    %10 = vector.shape_cast %9 : vector<8x128xf32> to vector<1x8x128xf32>
    %cst = arith.constant dense<0.000000e+00> : vector<8x128xf32>
    %11 = vector.multi_reduction <add>, %10, %cst [0] : vector<1x8x128xf32> to vector<8x128xf32>
    %12 = arith.addf %3, %11 : vector<8x128xf32>
    %c0_8 = arith.constant 0 : index
    %c0_9 = arith.constant 0 : index
    %13 = vector.load %arg5[%c0_8, %c0_9] : memref<8x128xf32, #tpu.memory_space<vmem>>, vector<8x128xf32>
    tpu.vector_store %arg5[%c0_8, %c0_9], %12 {strides = array<i32>} : memref<8x128xf32, #tpu.memory_space<vmem>>, vector<8x128xf32>,
    %c0_i32_10 = arith.constant 0 : i32
    %14 = arith.cmpi eq, %arg1, %c0_i32_10 : i32
    %15 = arith.extui %14 : i1 to i32
    %c0_i32_11 = arith.constant 0 : i32
    %16 = arith.cmpi ne, %15, %c0_i32_11 : i32
    scf.if %16 {
      %c0_12 = arith.constant 0 : index
      %c0_13 = arith.constant 0 : index
      %17 = vector.load %arg5[%c0_12, %c0_13] : memref<8x128xf32, #tpu.memory_space<vmem>>, vector<8x128xf32>
      %18 = vector.shape_cast %17 : vector<8x128xf32> to vector<1x8x128xf32>
      %cst_14 = arith.constant dense<0.000000e+00> : vector<1xf32>
      %19 = vector.multi_reduction <add>, %18, %cst_14 [1, 2] : vector<1x8x128xf32> to vector<1xf32>
      %20 = vector.shape_cast %19 : vector<1xf32> to vector<1x1x1xf32>
      %21 = vector.extract %20[0, 0, 0] : f32 from vector<1x1x1xf32>
      %cst_15 = arith.constant 9.765625E-4 : f32
      %22 = arith.mulf %21, %cst_15 : f32
      %23 = vector.broadcast %22 : f32 to vector<1x8x128xf32>
      %c0_16 = arith.constant 0 : index
      %c0_17 = arith.constant 0 : index
      %c0_18 = arith.constant 0 : index
      %24 = vector.load %arg4[%c0_16, %c0_17, %c0_18] : memref<1x8x128xf32, #tpu.memory_space<vmem>>, vector<1x8x128xf32>
      tpu.vector_store %arg4[%c0_16, %c0_17, %c0_18], %23 {strides = array<i32>} : memref<1x8x128xf32, #tpu.memory_space<vmem>>, vector<1x8x128xf32>,
    } else {
    }
    return
  }
  func.func @transform_0(%arg0: i32, %arg1: i32) -> (i32, i32, i32) {
    %c0_i32 = arith.constant 0 : i32
    %c0_i32_0 = arith.constant 0 : i32
    return %arg0, %arg1, %c0_i32 : i32, i32, i32
  }
  func.func @transform_1(%arg0: i32, %arg1: i32) -> (i32, i32, i32) {
    %c0_i32 = arith.constant 0 : i32
    %c0_i32_0 = arith.constant 0 : i32
    return %arg0, %arg1, %c0_i32 : i32, i32, i32
  }
  func.func @transform_2(%arg0: i32, %arg1: i32) -> (i32, i32, i32) {
    %c0_i32 = arith.constant 0 : i32
    %c0_i32_0 = arith.constant 0 : i32
    %c0_i32_1 = arith.constant 0 : i32
    return %arg0, %c0_i32, %c0_i32_0 : i32, i32, i32
  }
}

</mosaic_0001>

<bundles_post_ra>
// kernel: tpu_custom_call.1
= control target key start
LH: loop header
LB: loop body
LE: loop exit
PB: predicated region body
PF: predicated region fallthrough
CT: control target
= control target key end

     0   :  { %7 = vsyncpa [#allocation4], 0  ;;  %s836_s0 = inlined_call_operand.hbm [shape: f32[2,8,128], index: 0, kind: input, shape index: {}]   ;;  %s837_s1 = inlined_call_operand.hbm [shape: f32[2,8,128], index: 1, kind: input, shape index: {}]   ;;  %s838_s2 = inlined_call_operand.hbm [shape: f32[2,8,128], index: 2, kind: output, shape index: {}]  }
   0x1   :  { %9 = vsyncpa [#allocation4 + $0x1], 0 }
   0x2   :  { %10 = vsyncpa [#allocation7], 0 }
   0x3   :  { %12 = vsyncpa [#allocation7 + $0x1], 0 }
   0x4   :  { %13 = vsyncpa [#allocation5], 0 }
   0x5   :  { %15 = vsyncpa [#allocation5 + $0x1], 0  ;;  %s611_s9 = smov 0   ;;  %s613_s10 = smov 0  }
   0x6   :  { %s615_s11 = smov 0   ;;  %s617_s12 = smov 0  }
   0x7   :  { %s619_s13 = smov 0   ;;  %s621_s14 = smov 0  }
   0x8 LB: > { %s360_s15 = sadd.s32 4294967295, %s591_s14   ;;  %s361_s16 = sadd.s32 4294967294, %s591_s14   ;;  %s591_s14 = sphi %s621_s14, %s21_s14   ;;  %s587_s13 = sphi %s619_s13, %s858_s13   ;;  %s583_s12 = sphi %s617_s12, %s857_s12   ;;  %s579_s11 = sphi %s615_s11, %s856_s11   ;;  %s575_s10 = sphi %s613_s10, %s855_s10   ;;  %s571_s9 = sphi %s611_s9, %s854_s9  }
   0x9   : > { %s33_s17 = sadd.s32 1, %s587_s13  ;;  %s42_s18 = sadd.s32 1, %s579_s11 }
   0xa   : > { %p35_p0 = scmp.ge.s32.totalorder %s33_s17, 2  ;;  %p49_p1 = scmp.ne.s32.totalorder %s579_s11, %s575_s10 }
   0xb   : > { %p50_p2 = scmp.eq.s32.totalorder %s591_s14, 0  ;;  %p55_p3 = scmp.ne.s32.totalorder %s575_s10, %s571_s9 }
   0xc   : > { %s860_s17 = smov (%p35_p0, %s33_s17), 0  ;;  %p56_p5 = scmp.eq.s32.totalorder %s360_s15, 0 }
   0xd   : > { %p652_p4 = por %p50_p2, %p49_p1  ;;  %s37_s20 = ssub.s32 %s587_s13, %s860_s17 }
   0xe   : > { %p107_p6 = scmp.eq.s32.totalorder %s360_s15, 1  ;;  %p40_p7 = scmp.eq.s32.totalorder %s37_s20, 0 }
   0xf   : > { %p658_p8 = por %p56_p5, %p55_p3  ;;  %p113_p10 = scmp.eq.s32.totalorder %s361_s16, 1 }
  0x10   : > { %p662_p9 = por %p107_p6, %p49_p1  ;;  %p395_p13 = scmp.lt.s32.totalorder %s591_s14, 2 }
  0x11   : > { %s842_s21 = scalar_select %p658_p8, 1, 0 }
  0x12   : > { %s843_s22 = scalar_select %p662_p9, 1, 0 }
  0x13   : > { %s667_s23 = scalar_select %p40_p7, %s579_s11, %s42_s18  }
  0x14   : > { %p669_p11 = por %p113_p10, %p55_p3  ;;  %s676_s25 = sand.u32 1, %s579_s11  }
  0x15   : > { %s364_s26 = sshll.u32 %s676_s25, 3  ;;  %s365_s27 = sshll.u32 %s587_s13, 7 }
  0x16   : > { %s844_s24 = scalar_select %p669_p11, 1, 0 }
  0x17   : > { %s685_s30 = scalar_lea.hbm %s836_s0, %s365_s27  ;;  %s137_s3 = scalar_lea.vmem [#allocation3], %s364_s26 }
  0x18   : > { %s145_s4 = sshll.u32 %s137_s3, 4  ;;  %p693_p0 = pnand %p395_p13, %p652_p4  ;;  %s689_s4 = int_to_ptr.vmem [resolvable:$true] %s145_s4 }
  0x19   : > { %s134_s6 = scalar_lea.sflag [#allocation4], %s676_s25  ;;  %s445_s7 = scalar_lea.hbm %s685_s30, 128 }
  0x1a   : > { %p446_p3 = scmp.ne.s32.totalorder %s685_s30, %s445_s7  ;;  %p447_p5 = pneg %p693_p0 }
  0x1b   : > { %s450_s16 = scalar_lea.hbm %s836_s0, 256  ;;  %p451_p4 = scmp.lt.u32.totalorder %s685_s30, %s836_s0 }
  0x1c   : > { %p448_p6 = pnand %p447_p5, %p446_p3  ;;  %p452_p10 = scmp.lt.u32.totalorder %s450_s16, %s445_s7 }
  0x1d   : > { %p454_p12 = scmp.lt.u32.totalorder %s445_s7, %s685_s30 }
  0x1e   : > { %p449_p7 = pneg %p448_p6  ;;  %p453_p13 = por %p452_p10, %p451_p4 }
  0x20   : > { %p455_p1 = por %p454_p12, %p453_p13 }
  0x22   : > { %p456_p2 = pnand %p455_p1, %p449_p7 }
  0x24   : > { %459 = shalt.err (!%p456_p2)
}
  0x25   : > { %s460_s20 = scalar_lea.vmem %s689_s4, 128  ;;  %s593_s28 = smov [#allocation3]  }
  0x26   : > { %p461_p3 = scmp.ne.s32.totalorder %s689_s4, %s460_s20  ;;  %s465_s29 = sshll.u32 %s593_s28, 4  ;;  %s466_s29 = int_to_ptr.vmem [resolvable:$false] %s465_s29 }
  0x27   : > { %s467_s3 = scalar_lea.vmem %s466_s29, 256  ;;  %p468_p9 = scmp.lt.s32.totalorder %s689_s4, %s466_s29 }
  0x28   : > { %p463_p6 = pnand %p461_p3, %p447_p5  ;;  %p469_p4 = scmp.lt.s32.totalorder %s467_s3, %s460_s20 }
  0x2a   : > { %p464_p11 = pneg %p463_p6  ;;  %p470_p10 = por %p469_p4, %p468_p9 }
  0x2c   : > { %p471_p12 = pnand %p470_p10, %p464_p11 }
  0x2e   : > { %474 = shalt.err (!%p471_p12)
}
  0x2f   : > { %387 = dma.hbm_to_vmem [thread:$0]  (!%p693_p0), %s685_s30, 128, %s689_s4, %s134_s6  }
  0x30   : > { %p846_p1 = scmp.lt.s32.totalorder %s591_s14, 3  ;;  %p847_p2 = scmp.ge.s32.totalorder %s591_s14, 1 }
  0x31   : > { %s738_s16 = scalar_lea.hbm %s837_s1, %s365_s27  ;;  %s156_s18 = scalar_lea.vmem [#allocation6], %s364_s26 }
  0x32   : > { %p729_p7 = pnand %p847_p2, %p846_p1  ;;  %s164_s19 = sshll.u32 %s156_s18, 4  ;;  %s165_s19 = int_to_ptr.vmem [resolvable:$true] %s164_s19 }
  0x33   : > { %s153_s30 = scalar_lea.sflag [#allocation7], %s676_s25  ;;  %s475_s4 = scalar_lea.hbm %s738_s16, 128 }
  0x34   : > { %s848_s7 = scalar_select %p729_p7, 1, 0 }
  0x35   : > { %p476_p9 = scmp.ne.s32.totalorder %s738_s16, %s475_s4  ;;  %s480_s27 = scalar_lea.hbm %s837_s1, 256 }
  0x36   : > { %p481_p3 = scmp.lt.u32.totalorder %s738_s16, %s837_s1  ;;  %p482_p6 = scmp.lt.u32.totalorder %s480_s27, %s475_s4 }
  0x37   : > { %p478_p11 = pnand %p476_p9, %p447_p5  ;;  %p484_p10 = scmp.lt.u32.totalorder %s475_s4, %s738_s16 }
  0x38   : > { %p483_p4 = por %p482_p6, %p481_p3 }
  0x39   : > { %p479_p13 = pneg %p478_p11 }
  0x3a   : > { %p485_p12 = por %p484_p10, %p483_p4 }
  0x3c   : > { %p486_p1 = pnand %p485_p12, %p479_p13 }
  0x3e   : > { %489 = shalt.err (!%p486_p1)
}
  0x3f   : > { %s490_s25 = scalar_lea.vmem %s165_s19, 128  ;;  %s594_s26 = smov [#allocation6]  }
  0x40   : > { %p491_p2 = scmp.ne.s32.totalorder %s165_s19, %s490_s25  ;;  %s495_s3 = sshll.u32 %s594_s26, 4  ;;  %s496_s3 = int_to_ptr.vmem [resolvable:$false] %s495_s3 }
  0x41   : > { %s497_s8 = scalar_lea.vmem %s496_s3, 256  ;;  %p498_p8 = scmp.lt.s32.totalorder %s165_s19, %s496_s3 }
  0x42   : > { %p493_p9 = pnand %p491_p2, %p447_p5  ;;  %p499_p7 = scmp.lt.s32.totalorder %s497_s8, %s490_s25 }
  0x44   : > { %p494_p11 = pneg %p493_p9  ;;  %p500_p3 = por %p499_p7, %p498_p8 }
  0x46   : > { %p501_p6 = pnand %p500_p3, %p494_p11 }
  0x48   : > { %504 = shalt.err (!%p501_p6)
}
  0x49   : > { %390 = dma.hbm_to_vmem [thread:$0]  (!%p693_p0), %s738_s16, 128, %s165_s19, %s153_s30  }
  0x4a   : > { %p849_p13 = scmp.ne.s32.totalorder %s848_s7, 0 }
  0x4b   : > { %s765_s15 = sand.u32 (!%p849_p13), 1, %s575_s10   ;;  %p850_p8 = scmp.ne.s32.totalorder (!%p849_p13), %s842_s21, 0 }
  0x4c   : > { %173 = sbr.rel (%p849_p13) target bundleno = 312 (0x138), region = 28  ;;  %s768_s18 = sshll.u32 (!%p849_p13), %s765_s15, 3 }
  0x4d   : > { %s176_s4 = scalar_lea.sflag (!%p849_p13), [#allocation4], %s765_s15  ;;  %s179_s6 = scalar_lea.vmem (!%p849_p13), [#allocation3], %s768_s18 }
  0x53   : > { %558 = dma.done.wait (%p850_p8), %s176_s4, 128  }
  0x54   : > { %560 = vsyncadd (%p850_p8), %s176_s4, 4294967168  ;;  %s185_s5 = scalar_lea.sflag [#allocation7], %s765_s15  ;;  %s188_s7 = scalar_lea.vmem [#allocation6], %s768_s18 }
  0x55   : > { %562 = dma.done.wait (%p850_p8), %s185_s5, 128  }
  0x56   : > { %564 = vsyncadd (%p850_p8), %s185_s5, 4294967168  ;;  %v220_v0 = vld [vmem:[%s179_s6] sm:$0xff]  ;;  %v221_v1 = vld [vmem:[%s188_s7] sm:$0xff]  ;;  %s213_s16 = scalar_lea.vmem [#allocation8], %s768_s18  ;;  %s373_s19 = sshll.u32 %s583_s12, 7 }
  0x57   : > { %v222_v2 = vsub.f32 %v220_v0, %v221_v1  ;;  %s257_s21 = sshll.u32 %s213_s16, 4  ;;  %s787_s29 = scalar_lea.hbm %s838_s2, %s373_s19  ;;  %s789_s21 = int_to_ptr.vmem [resolvable:$true] %s257_s21 }
  0x58   : > { %s244_s25 = scalar_lea.sflag [#allocation5], %s765_s15  ;;  %s505_s26 = scalar_lea.vmem %s789_s21, 128 }
  0x59   : > { %v223_v3 = vmul.f32 %v222_v2, %v222_v2  ;;  %p506_p0 = scmp.ne.s32.totalorder %s789_s21, %s505_s26  ;;  %p851_p5 = scmp.ne.s32.totalorder %s843_s22, 0 }
  0x5a   : > { %s595_s12 = smov [#allocation8]  }
  0x5b   : > { %231 = vadd.xlane.f32.xlu0 %v223_v3  ;;  %p507_p7 = pnand %p506_p0, %p851_p5  ;;  %s509_s3 = sshll.u32 %s595_s12, 4  ;;  %s510_s3 = int_to_ptr.vmem [resolvable:$false] %s509_s3 }
  0x5c   : > { %s511_s8 = scalar_lea.vmem %s510_s3, 256  ;;  %p512_p10 = scmp.lt.s32.totalorder %s789_s21, %s510_s3 }
  0x5d   : > { %p508_p4 = pneg %p507_p7  ;;  %p513_p12 = scmp.lt.s32.totalorder %s511_s8, %s505_s26 }
  0x5f   : > { %p514_p1 = por %p513_p12, %p512_p10 }
  0x61   : > { %p515_p2 = pnand %p514_p1, %p508_p4 }
  0xe8   : > { %v232_v4 = vpop.xlane.xlu0 %231 }
  0xe9   : > { %v233_v5 = vrot.slane %v232_v4, 4 }
  0xeb   : > { %v234_v6 = vadd.f32 %v233_v5, %v232_v4 }
  0xed   : > { %v235_v7 = vrot.slane %v234_v6, 2 }
  0xef   : > { %v236_v8 = vadd.f32 %v235_v7, %v234_v6 }
  0xf1   : > { %v237_v9 = vrot.slane %v236_v8, 1 }
  0xf3   : > { %v238_v10 = vadd.f32 %v237_v9, %v236_v8 }
  0xf5   : > { %376 = vpush %v238_v10 }
 0x126   : > { %s377_s30 = spop %376 }
 0x127   : > { %s240_s20 = smul.f32 0.0009765625, %s377_s30 }
 0x129   : > { %v241_v11 = vstv %s240_s20 }
 0x12a   : > { %242 = vst [vmem:[%s213_s16] sm:$0xff] %v241_v11 }
 0x12b   : > { %518 = shalt.err (!%p515_p2)
}
 0x12c   : > { %s519_s15 = scalar_lea.hbm %s787_s29, 128  ;;  %s523_s6 = scalar_lea.hbm %s838_s2, 256 }
 0x12d   : > { %p520_p9 = scmp.ne.s32.totalorder %s787_s29, %s519_s15  ;;  %p524_p6 = scmp.lt.u32.totalorder %s787_s29, %s838_s2 }
 0x12e   : > { %p525_p13 = scmp.lt.u32.totalorder %s523_s6, %s519_s15  ;;  %p527_p0 = scmp.lt.u32.totalorder %s519_s15, %s787_s29 }
 0x12f   : > { %p521_p11 = pnand %p520_p9, %p851_p5 }
 0x130   : > { %p526_p8 = por %p525_p13, %p524_p6 }
 0x131   : > { %p522_p3 = pneg %p521_p11 }
 0x132   : > { %p528_p7 = por %p527_p0, %p526_p8 }
 0x134   : > { %p529_p4 = pnand %p528_p7, %p522_p3 }
 0x136   : > { %532 = shalt.err (!%p529_p4)
}
 0x137   : > { %382 = dma.vmem_to_hbm [thread:$0]  (%p851_p5), %s789_s21, 128, %s787_s29, %s244_s25  }
 0x138 PF: > { %s269_s16 = sand.u32 1, %s571_s9   ;;  %p852_p10 = scmp.ne.s32.totalorder %s844_s24, 0 }
 0x139   : > { %p853_p12 = scmp.ge.s32.totalorder %s591_s14, 2  ;;  %s270_s19 = scalar_lea.sflag [#allocation5], %s269_s16 }
 0x13b   : > { %p392_p1 = pnand %p853_p12, %p852_p10 }
 0x13d   : > { %566 = dma.done.wait (!%p392_p1), %s270_s19, 128  }
 0x13e   : > { %568 = vsyncadd (!%p392_p1), %s270_s19, 4294967168  ;;  %s21_s14 = sadd.s32 1, %s591_s14   ;;  %s854_s9 = smov %s575_s10 }
 0x13f   : > { %p18_p2 = scmp.ge.s32.totalorder %s21_s14, 4   ;;  %s855_s10 = smov %s579_s11 }
 0x140   : > { %s856_s11 = smov %s667_s23  ;;  %s857_s12 = smov %s587_s13 }
 0x141   : > { %s858_s13 = smov %s860_s17  ;;  %20 = sbr.rel (!%p18_p2) target bundleno = 8 (0x8), region = 94 }
 0x148   :  { %275 = vsyncpa [#allocation4], 1 }
 0x149   :  { %277 = vsyncpa [#allocation4 + $0x1], 1 }
 0x14a   :  { %278 = vsyncpa [#allocation7], 1 }
 0x14b   :  { %280 = vsyncpa [#allocation7 + $0x1], 1 }
 0x14c   :  { %281 = vsyncpa [#allocation5], 1 }
 0x14d   :  { %283 = vsyncpa [#allocation5 + $0x1], 1 }

</bundles_post_ra>
